<compile_context>
chip_gen: v6e
topology: v6e:2x2x1
jax: 0.10.0
libtpu: 0.0.40
codegen_flags: <defaults>
</compile_context>

<pallas_src>
import jax
import jax.numpy as jnp
from jax.experimental import pallas as pl
from jax.experimental.pallas import tpu as pltpu


def crelu_kernel(x_ref, o_ref):
    # x_ref: (1, C, St), o_ref: (1, 2C, St)
    x = x_ref[...]
    c = x.shape[1]
    o_ref[:, :c, :] = jnp.maximum(x, 0)
    o_ref[:, c:, :] = jnp.maximum(-x, 0)


def _choose_spatial_tile(hw, c, itemsize, vmem_budget_bytes=2 * 1024 * 1024,
                         pref_max=2048):
    """Pick a lane-dense spatial tile.

    Largest multiple of 128 that divides hw, capped so the double-buffered
    (input + output) blocks stay within a small VMEM budget. Falls back to the
    full extent when hw is not 128-aligned (block == full dim is always legal).
    """
    if hw <= 128 or hw % 128 != 0:
        return hw
    # (C + 2C) * St * itemsize per step, x2 for double buffering.
    max_st = max(128, vmem_budget_bytes // (2 * 3 * c * itemsize))
    cap = min(hw, max_st, pref_max)
    best = None
    t = 128
    while t <= cap:
        if hw % t == 0:
            best = t
        t += 128
    return best if best is not None else hw


def crelu4conv2d(x):
    """CReLU over the channel dim for NCHW inputs, as a single Pallas kernel."""
    N, C, H, W = x.shape
    HW = H * W
    itemsize = jnp.dtype(x.dtype).itemsize

    # Lane-dense layout: flatten spatial dims (free, row-major identical).
    x_flat = x.reshape(N, C, HW)

    st = _choose_spatial_tile(HW, C, itemsize)
    grid = (N, HW // st)

    cost = pl.CostEstimate(
        flops=2 * N * C * HW,              # one max + one negate-ish per elem
        transcendentals=0,
        bytes_accessed=3 * N * C * HW * itemsize,  # 1 read + 2 writes
    )

    out_flat = pl.pallas_call(
        crelu_kernel,
        out_shape=jax.ShapeDtypeStruct((N, 2 * C, HW), x.dtype),
        grid=grid,
        in_specs=[pl.BlockSpec((1, C, st), lambda n, t: (n, 0, t))],
        out_specs=pl.BlockSpec((1, 2 * C, st), lambda n, t: (n, 0, t)),
        compiler_params=pltpu.CompilerParams(
            dimension_semantics=("parallel", "parallel"),
            vmem_limit_bytes=32 * 1024 * 1024,
        ),
        cost_estimate=cost,
    )(x_flat)

    return out_flat.reshape(N, 2 * C, H, W)


if __name__ == "__main__":
    key = jax.random.PRNGKey(0)
    # Small, conv-like shapes: batch=2, channels=4, spatial=16x16.
    x = jax.random.normal(key, (2, 4, 16, 16), dtype=jnp.float32)

    out = jax.block_until_ready(crelu4conv2d(x))

    # Pure-JAX reference check.
    ref = jnp.concatenate([jnp.maximum(x, 0), jnp.maximum(-x, 0)], axis=1)
    assert out.shape == (2, 8, 16, 16), out.shape
    assert out.dtype == x.dtype, out.dtype
    assert jnp.allclose(out, ref), "mismatch vs reference"

    print("KERNEL_OK")
</pallas_src>

<mosaic_0001>
module attributes {stable_mosaic.version = 11 : i64} {
  func.func @crelu_kernel(%arg0: i32, %arg1: i32, %arg2: memref<1x4x256xf32, #tpu.memory_space<vmem>>, %arg3: memref<1x8x256xf32, #tpu.memory_space<vmem>>) attributes {dimension_semantics = [#tpu.dimension_semantics<parallel>, #tpu.dimension_semantics<parallel>], iteration_bounds = array<i64: 2, 1>, scalar_prefetch = 0 : i64, scratch_operands = 0 : i64, tpu.core_type = #tpu.core_type<tc>, window_params = [{transform_indices = @transform_0, window_bounds = array<i64: 1, 4, 256>}, {transform_indices = @transform_1, window_bounds = array<i64: 1, 8, 256>}]} {
    %c0 = arith.constant 0 : index
    %c0_0 = arith.constant 0 : index
    %c0_1 = arith.constant 0 : index
    %0 = vector.load %arg2[%c0, %c0_0, %c0_1] : memref<1x4x256xf32, #tpu.memory_space<vmem>>, vector<1x4x256xf32>
    %cst = arith.constant 0.000000e+00 : f32
    %1 = vector.broadcast %cst : f32 to vector<1x4x256xf32>
    %2 = arith.maximumf %0, %1 : vector<1x4x256xf32>
    %c0_2 = arith.constant 0 : index
    %c0_3 = arith.constant 0 : index
    %c0_4 = arith.constant 0 : index
    %3 = vector.load %arg3[%c0_2, %c0_3, %c0_4] : memref<1x8x256xf32, #tpu.memory_space<vmem>>, vector<1x4x256xf32>
    tpu.vector_store %arg3[%c0_2, %c0_3, %c0_4], %2 {strides = array<i32>} : memref<1x8x256xf32, #tpu.memory_space<vmem>>, vector<1x4x256xf32>,
    %cst_5 = arith.constant 0.000000e+00 : f32
    %4 = vector.broadcast %cst_5 : f32 to vector<1x4x256xf32>
    %5 = arith.subf %4, %0 : vector<1x4x256xf32>
    %cst_6 = arith.constant 0.000000e+00 : f32
    %6 = vector.broadcast %cst_6 : f32 to vector<1x4x256xf32>
    %7 = arith.maximumf %5, %6 : vector<1x4x256xf32>
    %c0_7 = arith.constant 0 : index
    %c4 = arith.constant 4 : index
    %c0_8 = arith.constant 0 : index
    %8 = vector.load %arg3[%c0_7, %c4, %c0_8] : memref<1x8x256xf32, #tpu.memory_space<vmem>>, vector<1x4x256xf32>
    tpu.vector_store %arg3[%c0_7, %c4, %c0_8], %7 {strides = array<i32>} : memref<1x8x256xf32, #tpu.memory_space<vmem>>, vector<1x4x256xf32>,
    return
  }
  func.func @transform_0(%arg0: i32, %arg1: i32) -> (i32, i32, i32) {
    %c0_i32 = arith.constant 0 : i32
    %c0_i32_0 = arith.constant 0 : i32
    return %arg0, %c0_i32, %arg1 : i32, i32, i32
  }
  func.func @transform_1(%arg0: i32, %arg1: i32) -> (i32, i32, i32) {
    %c0_i32 = arith.constant 0 : i32
    %c0_i32_0 = arith.constant 0 : i32
    return %arg0, %c0_i32, %arg1 : i32, i32, i32
  }
}

</mosaic_0001>

<bundles_post_ra>
// kernel: tpu_custom_call.1
= control target key start
LH: loop header
LB: loop body
LE: loop exit
PB: predicated region body
PF: predicated region fallthrough
CT: control target
= control target key end

     0   :  { %6 = vsyncpa [#allocation3], 0  ;;  %s610_s0 = inlined_call_operand.hbm [shape: f32[2,4,256], index: 0, kind: input, shape index: {}]   ;;  %s611_s1 = inlined_call_operand.hbm [shape: f32[2,8,256], index: 1, kind: output, shape index: {}]  }
   0x1   :  { %8 = vsyncpa [#allocation3 + $0x1], 0 }
   0x2   :  { %9 = vsyncpa [#allocation4], 0 }
   0x3   :  { %11 = vsyncpa [#allocation4 + $0x1], 0  ;;  %s469_s6 = smov 0   ;;  %s471_s7 = smov 0  }
   0x4   :  { %s473_s8 = smov 0   ;;  %s475_s9 = smov 0  }
   0x5   :  { %s477_s10 = smov 0   ;;  %s479_s11 = smov 0  }
   0x6 LB: > { %s268_s12 = sadd.s32 4294967295, %s455_s11   ;;  %s269_s13 = sadd.s32 4294967294, %s455_s11   ;;  %s455_s11 = sphi %s479_s11, %s17_s11   ;;  %s451_s10 = sphi %s477_s10, %s623_s10   ;;  %s447_s9 = sphi %s475_s9, %s622_s9   ;;  %s443_s8 = sphi %s473_s8, %s621_s8   ;;  %s439_s7 = sphi %s471_s7, %s620_s7   ;;  %s435_s6 = sphi %s469_s6, %s619_s6  }
   0x7   : > { %s29_s14 = sadd.s32 1, %s451_s10  ;;  %s38_s15 = sadd.s32 1, %s443_s8 }
   0x8   : > { %p31_p0 = scmp.ge.s32.totalorder %s29_s14, 2  ;;  %p45_p1 = scmp.ne.s32.totalorder %s443_s8, %s439_s7 }
   0x9   : > { %p46_p2 = scmp.eq.s32.totalorder %s455_s11, 0  ;;  %p51_p3 = scmp.ne.s32.totalorder %s439_s7, %s435_s6 }
   0xa   : > { %s625_s14 = smov (%p31_p0, %s29_s14), 0  ;;  %p52_p5 = scmp.eq.s32.totalorder %s268_s12, 0 }
   0xb   : > { %p510_p4 = por %p46_p2, %p45_p1  ;;  %s33_s17 = ssub.s32 %s451_s10, %s625_s14 }
   0xc   : > { %p77_p6 = scmp.eq.s32.totalorder %s268_s12, 1  ;;  %p36_p7 = scmp.eq.s32.totalorder %s33_s17, 0 }
   0xd   : > { %p516_p8 = por %p52_p5, %p51_p3  ;;  %p83_p10 = scmp.eq.s32.totalorder %s269_s13, 1 }
   0xe   : > { %p520_p9 = por %p77_p6, %p45_p1  ;;  %p297_p13 = scmp.lt.s32.totalorder %s455_s11, 2 }
   0xf   : > { %s525_s20 = scalar_select %p36_p7, %s443_s8, %s38_s15  }
  0x10   : > { %p527_p11 = por %p83_p10, %p51_p3  ;;  %s103_s22 = sand.u32 1, %s443_s8  }
  0x11   : > { %s272_s23 = sshll.u32 %s103_s22, 3  ;;  %s283_s24 = sshll.u32 %s451_s10, 7 }
  0x12   : > { %s615_s21 = scalar_select %p527_p11, 1, 0 }
  0x13   : > { %s115_s27 = scalar_lea.hbm %s610_s0, %s283_s24  ;;  %s107_s28 = scalar_lea.vmem [#allocation2], %s272_s23 }
  0x14   : > { %s117_s29 = sshll.u32 %s107_s28, 4  ;;  %p540_p0 = pnand %p297_p13, %p510_p4  ;;  %s118_s29 = int_to_ptr.vmem [resolvable:$true] %s117_s29 }
  0x15   : > { %p275_p1 = scmp.ge.s32.totalorder %s455_s11, 1  ;;  %p122_p2 = scmp.lt.s32.totalorder %s455_s11, 3 }
  0x16   : > { %s104_s2 = scalar_lea.sflag [#allocation3], %s103_s22  ;;  %p349_p3 = pneg %p540_p0 }
  0x17   : > { %s360_s3 = scalar_lea.vmem %s118_s29, 128  ;;  %s457_s4 = smov [#allocation2]  }
  0x18   : > { %p361_p5 = scmp.ne.s32.totalorder %s118_s29, %s360_s3  ;;  %s365_s5 = sshll.u32 %s457_s4, 4  ;;  %s366_s5 = int_to_ptr.vmem [resolvable:$false] %s365_s5 }
  0x19   : > { %s367_s12 = scalar_lea.vmem %s366_s5, 256  ;;  %p368_p10 = scmp.lt.s32.totalorder %s118_s29, %s366_s5 }
  0x1a   : > { %p363_p6 = pnand %p361_p5, %p349_p3  ;;  %p369_p12 = scmp.lt.s32.totalorder %s367_s12, %s360_s3 }
  0x1c   : > { %p364_p7 = pneg %p363_p6  ;;  %p370_p4 = por %p369_p12, %p368_p10 }
  0x1e   : > { %p371_p13 = pnand %p370_p4, %p364_p7 }
  0x20   : > { %374 = shalt.err (!%p371_p13)
}
  0x21   : > { %292 = dma.hbm_to_vmem [thread:$0]  (!%p540_p0), %s115_s27, 128, %s118_s29, %s104_s2  }
  0x22   : > { %p123_p11 = pnand %p275_p1, %p122_p2 }
  0x23   : > { %s555_s13 = sand.u32 (!%p123_p11), 1, %s439_s7  }
  0x24   : > { %126 = sbr.rel (%p123_p11) target bundleno = 66 (0x42), region = 24  ;;  %s276_s15 = sshll.u32 (!%p123_p11), %s555_s13, 3 }
  0x25   : > { %s129_s16 = scalar_lea.sflag (!%p123_p11), [#allocation3], %s555_s13  ;;  %s132_s17 = scalar_lea.vmem (!%p123_p11), [#allocation2], %s276_s15 }
  0x29   : > { %426 = dma.done.wait (%p516_p8), %s129_s16, 128  }
  0x2a   : > { %428 = vsyncadd (%p516_p8), %s129_s16, 4294967168  ;;  %s277_s22 = sshll.u32 %s555_s13, 4  ;;  %v153_v0 = vld [vmem:[%s132_s17] sm:$0xff]  ;;  %s284_s25 = sshll.u32 %s447_s9, 8 }
  0x2b   : > { %v154_v1 = vmax.f32 %v153_v0, 0.0  ;;  %v160_v2 = vsub.f32 0.0, %v153_v0  ;;  %s150_s23 = scalar_lea.vmem [#allocation5], %s277_s22  ;;  %s182_s27 = scalar_lea.hbm %s611_s1, %s284_s25 }
  0x2c   : > { %s184_s24 = sshll.u32 %s150_s23, 4  ;;  %s168_s28 = scalar_lea.sflag [#allocation4], %s555_s13  ;;  %s565_s24 = int_to_ptr.vmem [resolvable:$true] %s184_s24 }
  0x2d   : > { %158 = vst [vmem:[%s150_s23] sm:$0xf] %v154_v1  ;;  %v156_v3 = vcombine.high %v154_v1, %v154_v1  ;;  %v161_v4 = vmax.f32 %v160_v2, 0.0  ;;  %s375_s29 = scalar_lea.vmem %s565_s24, 256  ;;  %s458_s9 = smov [#allocation5]  }
  0x2e   : > { %p376_p8 = scmp.ne.s32.totalorder %s565_s24, %s375_s29  ;;  %s379_s30 = sshll.u32 %s458_s9, 4  ;;  %s380_s30 = int_to_ptr.vmem [resolvable:$false] %s379_s30 }
  0x2f   : > { %159 = vst [vmem:[%s150_s23 + $0x8] sm:$0xf] %v156_v3  ;;  %v163_v5 = vcombine.low %v161_v4, %v161_v4  ;;  %166 = vst [vmem:[%s150_s23 + $0x8] sm:$0xf0] %v161_v4  ;;  %s381_s2 = scalar_lea.vmem %s380_s30, 512  ;;  %p382_p0 = scmp.lt.s32.totalorder %s565_s24, %s380_s30 }
  0x30   : > { %p377_p11 = pnand %p376_p8, %p520_p9  ;;  %p383_p1 = scmp.lt.s32.totalorder %s381_s2, %s375_s29 }
  0x31   : > { %165 = vst [vmem:[%s150_s23] sm:$0xf0] %v163_v5 }
  0x32   : > { %p378_p12 = pneg %p377_p11  ;;  %p384_p2 = por %p383_p1, %p382_p0 }
  0x34   : > { %p385_p3 = pnand %p384_p2, %p378_p12 }
  0x36   : > { %388 = shalt.err (!%p385_p3)
}
  0x37   : > { %s389_s3 = scalar_lea.hbm %s182_s27, 256  ;;  %s393_s12 = scalar_lea.hbm %s611_s1, 512 }
  0x38   : > { %p390_p5 = scmp.ne.s32.totalorder %s182_s27, %s389_s3  ;;  %p394_p10 = scmp.lt.s32.totalorder %s182_s27, %s611_s1 }
  0x39   : > { %p395_p4 = scmp.lt.s32.totalorder %s393_s12, %s389_s3 }
  0x3a   : > { %p391_p6 = pnand %p390_p5, %p520_p9 }
  0x3b   : > { %p396_p13 = por %p395_p4, %p394_p10 }
  0x3c   : > { %p392_p7 = pneg %p391_p6 }
  0x3e   : > { %p397_p8 = pnand %p396_p13, %p392_p7 }
  0x40   : > { %400 = shalt.err (!%p397_p8)
}
  0x41   : > { %287 = dma.vmem_to_hbm [thread:$0]  (%p520_p9), %s565_s24, 256, %s182_s27, %s168_s28  }
  0x42 PF: > { %s196_s16 = sand.u32 1, %s435_s6   ;;  %p617_p11 = scmp.ne.s32.totalorder %s615_s21, 0 }
  0x43   : > { %p618_p12 = scmp.ge.s32.totalorder %s455_s11, 2  ;;  %s197_s17 = scalar_lea.sflag [#allocation4], %s196_s16 }
  0x45   : > { %p294_p0 = pnand %p618_p12, %p617_p11 }
  0x47   : > { %p295_p1 = pneg %p294_p0 }
  0x49   : > { %430 = dma.done.wait (%p295_p1), %s197_s17, 256  }
  0x4a   : > { %432 = vsyncadd (%p295_p1), %s197_s17, 4294967040  ;;  %s17_s11 = sadd.s32 1, %s455_s11   ;;  %s619_s6 = smov %s439_s7 }
  0x4b   : > { %p14_p2 = scmp.ge.s32.totalorder %s17_s11, 4   ;;  %s620_s7 = smov %s443_s8 }
  0x4c   : > { %s621_s8 = smov %s525_s20  ;;  %s622_s9 = smov %s451_s10 }
  0x4d   : > { %s623_s10 = smov %s625_s14  ;;  %16 = sbr.rel (!%p14_p2) target bundleno = 6 (0x6), region = 69 }
  0x52   :  { %202 = vsyncpa [#allocation3], 1 }
  0x53   :  { %204 = vsyncpa [#allocation3 + $0x1], 1 }
  0x54   :  { %205 = vsyncpa [#allocation4], 1 }
  0x55   :  { %207 = vsyncpa [#allocation4 + $0x1], 1 }

</bundles_post_ra>
